<compile_context>
chip_gen: v7x
topology: tpu7x:2x2x1
jax: 0.10.0
libtpu: 0.0.40
codegen_flags: <defaults>
</compile_context>

<pallas_src>
import functools

import jax
import jax.numpy as jnp
from jax import lax
from jax.experimental import pallas as pl
from jax.experimental.pallas import tpu as pltpu


# Stay comfortably under v7x's 64 MiB physical VMEM (v5e/v6e have 128 MiB)
# while raising the 32 MiB scoped default so larger tiles still double-buffer.
_VMEM_LIMIT_BYTES = 48 * 1024 * 1024


def _fit(dim, target):
    # Use the target tile when it divides the dim (realistic sizes); otherwise
    # fall back to the full dim, which satisfies the (8,128)-or-full-dim rule
    # at the small demo shapes.
    # TODO(synk): pad ragged production dims instead of taking full-dim blocks.
    return target if dim % target == 0 else dim


def _pick_heads_per_block(n_heads, head_dim, target_lanes=512):
    # Smallest head-block whose lane width is >= target_lanes while keeping
    # every sub-block BlockSpec-legal: Hblk*D multiple of 128 and Hblk a
    # multiple of 8 (for the (Hblk, Dm) gate-weight block), unless the block
    # covers all heads (full-dim blocks are always legal).
    want = min(target_lanes, n_heads * head_dim)
    for hpb in range(1, n_heads + 1):
        if n_heads % hpb:
            continue
        lanes = hpb * head_dim
        legal = (hpb == n_heads) or (lanes % 128 == 0 and hpb % 8 == 0)
        if legal and lanes >= want:
            return hpb
    return n_heads


# ----------------------------- Pallas kernels ------------------------------


def _matmul_kernel(x_ref, w_ref, o_ref, acc_ref):
    # o = x @ w : K-tiled with an f32 VMEM accumulator (operand dtypes are
    # whatever the wrapper feeds — bf16 for the dense paths).
    @pl.when(pl.program_id(2) == 0)
    def _init():
        acc_ref[...] = jnp.zeros_like(acc_ref)

    acc_ref[...] += jnp.dot(x_ref[...], w_ref[...],
                            preferred_element_type=jnp.float32)

    @pl.when(pl.program_id(2) == pl.num_programs(2) - 1)
    def _fin():
        o_ref[...] = acc_ref[...].astype(o_ref.dtype)


def _retention_kernel(x_ref, wgt_ref, q_ref, k_ref, v_ref, g_ref,
                      cos_ref, sin_ref, causal_ref, nbias_ref, o_ref, *,
                      heads_per_block, head_dim, scale, eps, gate_norm):
    # One grid step = one batch element, one lane-dense head block (T, Hb*D).
    f32 = jnp.float32
    bf16 = jnp.bfloat16
    D = head_dim
    D2 = D // 2

    # ---- gate projection (f32 end-to-end) + stable logsigmoid --------------
    gt = lax.dot_general(x_ref[...], wgt_ref[...], (((1,), (1,)), ((), ())),
                         preferred_element_type=f32)            # (T, Hb)
    glog = (jnp.minimum(gt, 0.0)
            - jnp.log(1.0 + jnp.exp(-jnp.abs(gt)))) * (1.0 / gate_norm)

    # ---- inclusive log-decay prefix sums for all heads in the block --------
    causal = causal_ref[...]                                    # (T, T) 0/1 f32
    nbias = nbias_ref[...]                                      # (T, T) 0 / -1e30
    c_col = jnp.dot(causal, glog, preferred_element_type=f32)   # (T, Hb)
    c_row = c_col.T                                             # (Hb, T) — XLU

    ch = cos_ref[...]                                           # (T, D/2) f32
    sh = sin_ref[...]

    q = q_ref[...].astype(f32)                                  # (T, Hb*D)
    k = k_ref[...].astype(f32)
    v = v_ref[...]                                              # bf16
    g = g_ref[...].astype(f32)

    outs = []
    for h in range(heads_per_block):                            # static, small
        lo = h * D
        # Half-form rotary: Wq/Wk columns were de-interleaved per head in
        # prepare_params (evens first, then odds), so interleaved rotary is
        # contiguous-half elementwise math; q·k is invariant to the reorder.
        q1, q2 = q[:, lo:lo + D2], q[:, lo + D2:lo + D]
        k1, k2 = k[:, lo:lo + D2], k[:, lo + D2:lo + D]
        qh = jnp.concatenate([q1 * ch - q2 * sh, q2 * ch + q1 * sh], axis=-1)
        kh = jnp.concatenate([k1 * ch - k2 * sh, k2 * ch + k1 * sh], axis=-1)

        # decay[t, s] = exp(cum_t - cum_s) on the causal triangle, 0 elsewhere.
        # Additive -1e30 bias keeps the exponent finite; exp underflows to 0.
        diff = c_col[:, h:h + 1] - c_row[h:h + 1, :]            # (T, T)
        decay = jnp.exp(diff + nbias)

        s_h = lax.dot_general(qh.astype(bf16), kh.astype(bf16),
                              (((1,), (1,)), ((), ())),
                              preferred_element_type=f32) * scale
        p = (s_h * decay).astype(bf16)
        oh = jnp.dot(p, v[:, lo:lo + D], preferred_element_type=f32)  # (T, D)

        # subln: RMSNorm over head_dim, no affine.
        oh = oh * lax.rsqrt(jnp.mean(oh * oh, axis=-1, keepdims=True) + eps)

        # fused swiglu epilogue: silu(g) * o  (divide on the EUP slot).
        gh = g[:, lo:lo + D]
        sig = pl.reciprocal(1.0 + jnp.exp(-gh), approx=True)
        outs.append((gh * sig * oh).astype(bf16))

    # Single lane-dense store of the whole head-block slab.
    o_ref[...] = jnp.concatenate(outs, axis=-1)


# ------------------------------ JAX wrappers --------------------------------


def pallas_matmul(x, w, *, out_dtype=jnp.float32, tm=512, tn=512, tk=512):
    M, K = x.shape
    N = w.shape[1]
    tm, tn, tk = _fit(M, tm), _fit(N, tn), _fit(K, tk)
    grid = (M // tm, N // tn, K // tk)
    return pl.pallas_call(
        _matmul_kernel,
        out_shape=jax.ShapeDtypeStruct((M, N), out_dtype),
        grid=grid,
        in_specs=[pl.BlockSpec((tm, tk), lambda i, j, k: (i, k)),
                  pl.BlockSpec((tk, tn), lambda i, j, k: (k, j))],
        out_specs=pl.BlockSpec((tm, tn), lambda i, j, k: (i, j)),
        scratch_shapes=[pltpu.VMEM((tm, tn), jnp.float32)],
        compiler_params=pltpu.CompilerParams(
            dimension_semantics=("parallel", "parallel", "arbitrary"),
            vmem_limit_bytes=_VMEM_LIMIT_BYTES),
    )(x, w)


def pallas_gate_retention_core(x, wgt_t, q, k, v, g, cos, sin, causal, nbias, *,
                               n_heads, head_dim, scale, eps, gate_norm):
    # x: (B, T, Dm) f32; wgt_t: (H, Dm) f32; q/k/v/g: (B, T, H*D) bf16
    # (q/k with de-interleaved per-head columns); cos/sin: (T, D/2) f32;
    # causal/nbias: (T, T) f32 tables.  Output: gated = silu(g)*subln(o), bf16.
    B, T, HD = q.shape
    Dm = x.shape[-1]
    hpb = _pick_heads_per_block(n_heads, head_dim)
    nhb = n_heads // hpb
    hdb = hpb * head_dim
    d2 = head_dim // 2

    act_spec = pl.BlockSpec((None, T, hdb), lambda b, hb: (b, 0, hb))
    x_spec = pl.BlockSpec((None, T, Dm), lambda b, hb: (b, 0, 0))
    wgt_spec = pl.BlockSpec((hpb, Dm), lambda b, hb: (hb, 0))
    rot_spec = pl.BlockSpec((T, d2), lambda b, hb: (0, 0))
    tt_spec = pl.BlockSpec((T, T), lambda b, hb: (0, 0))

    kern = functools.partial(_retention_kernel, heads_per_block=hpb,
                             head_dim=head_dim, scale=scale, eps=eps,
                             gate_norm=gate_norm)
    return pl.pallas_call(
        kern,
        out_shape=jax.ShapeDtypeStruct((B, T, HD), jnp.bfloat16),
        grid=(B, nhb),
        in_specs=[x_spec, wgt_spec, act_spec, act_spec, act_spec, act_spec,
                  rot_spec, rot_spec, tt_spec, tt_spec],
        out_specs=act_spec,
        compiler_params=pltpu.CompilerParams(
            dimension_semantics=("parallel", "parallel"),
            vmem_limit_bytes=_VMEM_LIMIT_BYTES),
    )(x, wgt_t, q, k, v, g, cos, sin, causal, nbias)


def prepare_params(params_f32, *, n_heads, head_dim):
    # Hoisted once per model (NOT per forward):
    #  * de-interleave Wq/Wk columns per head (evens first, then odds) so the
    #    interleaved rotary becomes pure elementwise math in the kernel
    #    (q·k inner products are invariant to the per-head reorder),
    #  * fuse the big projections and cast MXU weight operands to bf16,
    #  * keep the tiny gate projection weight in f32 (transposed) for gate
    #    precision — it is applied inside the retention kernel.
    idx = jnp.arange(n_heads * head_dim).reshape(n_heads, head_dim)
    perm = jnp.concatenate([idx[:, 0::2], idx[:, 1::2]], axis=1).reshape(-1)
    w_all = jnp.concatenate(
        [params_f32["wq"][:, perm], params_f32["wk"][:, perm],
         params_f32["wv"], params_f32["wg"]], axis=1)
    return {"w_all": w_all.astype(jnp.bfloat16),
            "w_out": params_f32["wout"].astype(jnp.bfloat16),
            "wgt_t": jnp.asarray(params_f32["wgt"].T, jnp.float32)}


def make_retention_tables(T):
    # Built once: 0/1 causal mask (for the prefix-sum gemm) and a 0/-1e30
    # additive bias (masks the decay exponent before exp, exp(-1e30)=0).
    row = jnp.arange(T)[:, None]
    col = jnp.arange(T)[None, :]
    causal = (col <= row).astype(jnp.float32)
    nbias = (1.0 - causal) * jnp.float32(-1e30)
    return causal, nbias


def gate_retention_forward(x, params, cos, sin, causal, nbias, *, n_heads,
                           head_dim, eps, gate_logit_normalizer=16):
    B, T, Dm = x.shape
    HD = n_heads * head_dim

    # Fused projections [Wq|Wk|Wv|Wg] at bf16 (half the HBM traffic).
    x2d_bf = x.reshape(B * T, Dm).astype(jnp.bfloat16)
    y = pallas_matmul(x2d_bf, params["w_all"], out_dtype=jnp.bfloat16)

    q = y[:, 0 * Dm:1 * Dm].reshape(B, T, HD)
    k = y[:, 1 * Dm:2 * Dm].reshape(B, T, HD)
    v = y[:, 2 * Dm:3 * Dm].reshape(B, T, HD)
    g = y[:, 3 * Dm:4 * Dm].reshape(B, T, HD)

    # gate proj + rotary + decay + retention + subln + swiglu, all fused,
    # lane-dense bf16 output.
    gated = pallas_gate_retention_core(
        x, params["wgt_t"], q, k, v, g, cos, sin, causal, nbias,
        n_heads=n_heads, head_dim=head_dim,
        scale=float(head_dim) ** -0.5, eps=eps,
        gate_norm=float(gate_logit_normalizer))                 # (B, T, HD) bf16

    # out_proj: plain tiled bf16 matmul with f32 accumulation.
    out = pallas_matmul(gated.reshape(B * T, HD), params["w_out"],
                        out_dtype=jnp.float32)
    return out.reshape(B, T, Dm)


# --------------------------- pure-JAX reference ------------------------------


def _reference_forward(x, params_f32, cos, sin, *, n_heads, head_dim, eps,
                       gate_logit_normalizer):
    B, T, Dm = x.shape
    H, D = n_heads, head_dim
    q = x @ params_f32["wq"]
    k = x @ params_f32["wk"]
    v = x @ params_f32["wv"]
    g = x @ params_f32["wg"]
    gt = x @ params_f32["wgt"]

    def rot(u):                       # u: (B, T, H, D), interleaved rotary
        u1, u2 = u[..., 0::2], u[..., 1::2]
        c, s = cos[None, :, None, :], sin[None, :, None, :]
        return jnp.stack([u1 * c - u2 * s, u1 * s + u2 * c], axis=-1).reshape(u.shape)

    qr = rot(q.reshape(B, T, H, D)).transpose(0, 2, 1, 3)       # (B, H, T, D)
    kr = rot(k.reshape(B, T, H, D)).transpose(0, 2, 1, 3)
    vh = v.reshape(B, T, H, D).transpose(0, 2, 1, 3)
    glog = jax.nn.log_sigmoid(gt.transpose(0, 2, 1)) / gate_logit_normalizer

    c = jnp.cumsum(glog, axis=-1)                               # (B, H, T)
    diff = c[..., :, None] - c[..., None, :]                    # (B, H, T, T)
    causal = jnp.tril(jnp.ones((T, T), dtype=bool))
    decay = jnp.where(causal, jnp.exp(jnp.where(causal, diff, 0.0)), 0.0)
    scores = jnp.einsum("bhtd,bhsd->bhts", qr, kr) * (float(D) ** -0.5)
    o = jnp.einsum("bhts,bhsd->bhtd", scores * decay, vh)
    o = o * lax.rsqrt(jnp.mean(o * o, axis=-1, keepdims=True) + eps)
    o = o.transpose(0, 2, 1, 3).reshape(B, T, H * D)
    return (g * jax.nn.sigmoid(g) * o) @ params_f32["wout"]


# ---------------------------------- main -------------------------------------


if __name__ == "__main__":
    # Small config consistent with the module:
    #   dim=32, n_self_heads=4, model_parallel_size=1 -> head_dim=8
    B, T = 2, 8
    dim = 32
    n_heads = 4
    head_dim = dim // n_heads
    norm_eps = 1e-5
    gate_logit_normalizer = 16

    key = jax.random.PRNGKey(0)
    kx, kq, kk, kv, kg, kgt, ko = jax.random.split(key, 7)
    std = dim ** -0.5
    params_f32 = {
        "wq": jax.random.normal(kq, (dim, dim), jnp.float32) * std,
        "wk": jax.random.normal(kk, (dim, dim), jnp.float32) * std,
        "wv": jax.random.normal(kv, (dim, dim), jnp.float32) * std,
        "wg": jax.random.normal(kg, (dim, dim), jnp.float32) * std,
        "wgt": jax.random.normal(kgt, (dim, n_heads), jnp.float32) * std,
        "wout": jax.random.normal(ko, (dim, dim), jnp.float32) * std,
    }
    x = jax.random.normal(kx, (B, T, dim), jnp.float32)

    # rel_pos rotary tables of shape (T, head_dim // 2).
    inv_freq = 1.0 / (10000.0 ** (jnp.arange(0, head_dim, 2, dtype=jnp.float32)
                                  / head_dim))
    angles = jnp.outer(jnp.arange(T, dtype=jnp.float32), inv_freq)
    cos, sin = jnp.cos(angles), jnp.sin(angles)

    # Hoisted once: permuted/fused bf16 weights, f32 gate weight, causal tables.
    params = prepare_params(params_f32, n_heads=n_heads, head_dim=head_dim)
    causal_tbl, nbias_tbl = make_retention_tables(T)

    out = gate_retention_forward(
        x, params, cos, sin, causal_tbl, nbias_tbl,
        n_heads=n_heads, head_dim=head_dim, eps=norm_eps,
        gate_logit_normalizer=gate_logit_normalizer)
    out = jax.block_until_ready(out)

    assert out.shape == (B, T, dim)
    assert bool(jnp.all(jnp.isfinite(out)))

    # Structural correctness check against a pure-JAX f32 reference (kernels
    # feed the MXU bf16 operands, so allow a modest tolerance).
    ref = _reference_forward(x, params_f32, cos, sin, n_heads=n_heads,
                             head_dim=head_dim, eps=norm_eps,
                             gate_logit_normalizer=gate_logit_normalizer)
    max_err = float(jnp.max(jnp.abs(out - ref)))
    ref_scale = float(jnp.max(jnp.abs(ref)))
    assert max_err <= 0.15 * ref_scale + 0.05, (max_err, ref_scale)

    print("KERNEL_OK")
</pallas_src>

<mosaic_0001>
module attributes {stable_mosaic.version = 11 : i64} {
  func.func @_matmul_kernel(%arg0: i32, %arg1: i32, %arg2: i32, %arg3: memref<16x32xbf16, #tpu.memory_space<vmem>>, %arg4: memref<32x128xbf16, #tpu.memory_space<vmem>>, %arg5: memref<16x128xbf16, #tpu.memory_space<vmem>>, %arg6: memref<16x128xf32, #tpu.memory_space<vmem>>) attributes {dimension_semantics = [#tpu.dimension_semantics<parallel>, #tpu.dimension_semantics<parallel>, #tpu.dimension_semantics<arbitrary>], iteration_bounds = array<i64: 1, 1, 1>, scalar_prefetch = 0 : i64, scratch_operands = 1 : i64, tpu.core_type = #tpu.core_type<tc>, window_params = [{transform_indices = @transform_0, window_bounds = array<i64: 16, 32>}, {transform_indices = @transform_1, window_bounds = array<i64: 32, 128>}, {transform_indices = @transform_2, window_bounds = array<i64: 16, 128>}]} {
    %c0_i32 = arith.constant 0 : i32
    %0 = arith.cmpi eq, %arg2, %c0_i32 : i32
    %1 = arith.extui %0 : i1 to i32
    %c0_i32_0 = arith.constant 0 : i32
    %2 = arith.cmpi ne, %1, %c0_i32_0 : i32
    scf.if %2 {
      %cst_10 = arith.constant 0.000000e+00 : f32
      %12 = vector.broadcast %cst_10 : f32 to vector<16x128xf32>
      %c0_11 = arith.constant 0 : index
      %c0_12 = arith.constant 0 : index
      %13 = vector.load %arg6[%c0_11, %c0_12] : memref<16x128xf32, #tpu.memory_space<vmem>>, vector<16x128xf32>
      tpu.vector_store %arg6[%c0_11, %c0_12], %12 {strides = array<i32>} : memref<16x128xf32, #tpu.memory_space<vmem>>, vector<16x128xf32>,
    } else {
    }
    %c0 = arith.constant 0 : index
    %c0_1 = arith.constant 0 : index
    %3 = vector.load %arg6[%c0, %c0_1] : memref<16x128xf32, #tpu.memory_space<vmem>>, vector<16x128xf32>
    %c0_2 = arith.constant 0 : index
    %c0_3 = arith.constant 0 : index
    %4 = vector.load %arg3[%c0_2, %c0_3] : memref<16x32xbf16, #tpu.memory_space<vmem>>, vector<16x32xbf16>
    %c0_4 = arith.constant 0 : index
    %c0_5 = arith.constant 0 : index
    %5 = vector.load %arg4[%c0_4, %c0_5] : memref<32x128xbf16, #tpu.memory_space<vmem>>, vector<32x128xbf16>
    %cst = arith.constant dense<0.000000e+00> : vector<16x128xf32>
    %6 = tpu.matmul %4, %5, %cst {dimension_numbers = #tpu.dot_dimension_numbers<[1], [0], [0], [1], [0, 0, 1, 1], [], []>} : vector<16x32xbf16>, vector<32x128xbf16>, vector<16x128xf32> -> vector<16x128xf32>
    %7 = arith.addf %3, %6 : vector<16x128xf32>
    %c0_6 = arith.constant 0 : index
    %c0_7 = arith.constant 0 : index
    %8 = vector.load %arg6[%c0_6, %c0_7] : memref<16x128xf32, #tpu.memory_space<vmem>>, vector<16x128xf32>
    tpu.vector_store %arg6[%c0_6, %c0_7], %7 {strides = array<i32>} : memref<16x128xf32, #tpu.memory_space<vmem>>, vector<16x128xf32>,
    %c0_i32_8 = arith.constant 0 : i32
    %9 = arith.cmpi eq, %arg2, %c0_i32_8 : i32
    %10 = arith.extui %9 : i1 to i32
    %c0_i32_9 = arith.constant 0 : i32
    %11 = arith.cmpi ne, %10, %c0_i32_9 : i32
    scf.if %11 {
      %c0_10 = arith.constant 0 : index
      %c0_11 = arith.constant 0 : index
      %12 = vector.load %arg6[%c0_10, %c0_11] : memref<16x128xf32, #tpu.memory_space<vmem>>, vector<16x128xf32>
      %13 = arith.truncf %12 : vector<16x128xf32> to vector<16x128xbf16>
      %c0_12 = arith.constant 0 : index
      %c0_13 = arith.constant 0 : index
      %14 = vector.load %arg5[%c0_12, %c0_13] : memref<16x128xbf16, #tpu.memory_space<vmem>>, vector<16x128xbf16>
      tpu.vector_store %arg5[%c0_12, %c0_13], %13 {strides = array<i32>} : memref<16x128xbf16, #tpu.memory_space<vmem>>, vector<16x128xbf16>,
    } else {
    }
    return
  }
  func.func @transform_0(%arg0: i32, %arg1: i32, %arg2: i32) -> (i32, i32) {
    %c0_i32 = arith.constant 0 : i32
    return %arg0, %arg2 : i32, i32
  }
  func.func @transform_1(%arg0: i32, %arg1: i32, %arg2: i32) -> (i32, i32) {
    %c0_i32 = arith.constant 0 : i32
    return %arg2, %arg1 : i32, i32
  }
  func.func @transform_2(%arg0: i32, %arg1: i32, %arg2: i32) -> (i32, i32) {
    %c0_i32 = arith.constant 0 : i32
    return %arg0, %arg1 : i32, i32
  }
}

</mosaic_0001>

<bundles_post_ra>
// kernel: tpu_custom_call.1
= control target key start
LH: loop header
LB: loop body
LE: loop exit
PB: predicated region body
PF: predicated region fallthrough
CT: control target
= control target key end

     0   :  { %7 = vsyncpa [#allocation4], 0  ;;  %s327_s0 = inlined_call_operand.hbm [shape: bf16[16,32], index: 0, kind: input, shape index: {}]   ;;  %s328_s1 = inlined_call_operand.hbm [shape: bf16[32,128], index: 1, kind: input, shape index: {}]   ;;  %s329_s2 = inlined_call_operand.hbm [shape: bf16[16,128], index: 2, kind: output, shape index: {}]  }
   0x1   :  { %8 = vsyncpa [#allocation7], 0 }
   0x2   :  { %9 = vsyncpa [#allocation5], 0  ;;  %s260_s9 = smov [#allocation3]   ;;  %s188_s13 = scalar_lea.hbm %s327_s0, 128 }
   0x3   :  { %s15_s10 = sshll.u32 %s260_s9, 4  ;;  %p189_p0 = scmp.ne.s32.totalorder %s327_s0, %s188_s13  ;;  %s16_s10 = int_to_ptr.vmem [resolvable:$true] %s15_s10 }
   0x4   :  { %p192_p1 = scmp.lt.u32.totalorder %s188_s13, %s327_s0 }
   0x6   :  { %p194_p2 = pnand %p192_p1, %p189_p0 }
   0x8   :  { %197 = shalt.err (!%p194_p2)
}
   0x9   :  { %s198_s18 = scalar_lea.vmem %s16_s10, 128  ;;  %p203_p4 = scmp.lt.s32.totalorder %s16_s10, %s16_s10 }
   0xa   :  { %p199_p3 = scmp.ne.s32.totalorder %s16_s10, %s198_s18  ;;  %p204_p5 = scmp.lt.s32.totalorder %s198_s18, %s198_s18 }
   0xc   :  { %p205_p6 = por %p204_p5, %p203_p4 }
   0xe   :  { %p206_p7 = pnand %p205_p6, %p199_p3 }
  0x10   :  { %209 = shalt.err (!%p206_p7)
}
  0x11   :  { %s261_s19 = smov 64   ;;  %s262_s20 = smov 4  }
  0x12   :  { %21 = dma.hbm_to_vmem [thread:$0]  %s327_s0, 128, %s16_s10, [#allocation4], %s261_s19, %s261_s19, %s262_s20  }
  0x13   :  { %s263_s23 = smov [#allocation6]   ;;  %s210_s27 = scalar_lea.hbm %s328_s1, 256 }
  0x14   :  { %s27_s24 = sshll.u32 %s263_s23, 4  ;;  %p211_p8 = scmp.ne.s32.totalorder %s328_s1, %s210_s27  ;;  %s28_s24 = int_to_ptr.vmem [resolvable:$true] %s27_s24 }
  0x15   :  { %p214_p9 = scmp.lt.u32.totalorder %s210_s27, %s328_s1 }
  0x17   :  { %p216_p10 = pnand %p214_p9, %p211_p8 }
  0x19   :  { %219 = shalt.err (!%p216_p10)
}
  0x1a   :  { %s220_s4 = scalar_lea.vmem %s28_s24, 256  ;;  %p225_p12 = scmp.lt.s32.totalorder %s28_s24, %s28_s24 }
  0x1b   :  { %p221_p11 = scmp.ne.s32.totalorder %s28_s24, %s220_s4  ;;  %p226_p13 = scmp.lt.s32.totalorder %s220_s4, %s220_s4 }
  0x1d   :  { %p227_p0 = por %p226_p13, %p225_p12 }
  0x1f   :  { %p228_p1 = pnand %p227_p0, %p221_p11 }
  0x21   :  { %231 = shalt.err (!%p228_p1)
}
  0x22   :  { %33 = dma.hbm_to_vmem [thread:$0]  %s328_s1, 256, %s28_s24, [#allocation7], %s261_s19, %s261_s19, %s262_s20  }
  0x23   :  { %254 = dma.done.wait [#allocation4], 128  }
  0x24   :  { %255 = vsyncadd [#allocation4], 4294967168 }
  0x25   :  { %256 = dma.done.wait [#allocation7], 256  }
  0x26   :  { %257 = vsyncadd [#allocation7], 4294967040  ;;  %v264_v0 = vmov 0.0   ;;  %vm265_vm0 = vmmov 0   ;;  %v185_v1 = vld [vmem:[#allocation6] sm:$0xff]   ;;  %v186_v2 = vld [vmem:[#allocation6 + $0x8] sm:$0xff]  }
  0x27   :  { %170 = vmatprep.subr.bf16.mxu0 %v264_v0  ;;  %174 = vmatprep.mubr.msk.bf16.mxu0 %vm265_vm0, %v264_v0  ;;  %v187_v3 = vld [vmem:[#allocation3] sm:$0xff]   ;;  %vm72_vm1 = vcmask 261120   ;;  %s266_s6 = smov [#allocation8]  }
  0x28   :  { %171 = vmatpush3.bf16.msra.mxu0 %v185_v1  ;;  %s141_s7 = sshll.u32 %s266_s6, 4  ;;  %s142_s7 = int_to_ptr.vmem [resolvable:$true] %s141_s7 }
  0x29   :  { %172 = vmatprep.subr.bf16.mxu0 %v264_v0  ;;  %s232_s1 = scalar_lea.vmem %s142_s7, 128  ;;  %p237_p3 = scmp.lt.s32.totalorder %s142_s7, %s142_s7 }
  0x2a   :  { %p233_p2 = scmp.ne.s32.totalorder %s142_s7, %s232_s1  ;;  %p238_p4 = scmp.lt.s32.totalorder %s232_s1, %s232_s1 }
  0x2c   :  { %173 = vmatpush3.bf16.msra.mxu0 %v186_v2  ;;  %p239_p5 = por %p238_p4, %p237_p3 }
  0x2e   :  { %p240_p6 = pnand %p239_p5, %p233_p2 }
  0x2f   :  { %175 = vmatmul.mubr.msk.bf16.vlgmr.msra.gmra.mrb[0].mxu0 %vm72_vm1, %v187_v3 }
 0x102   :  { %v110_v4 = vpop.f32.mrb[0].mxu0 }
 0x103   :  { %v176_v5 = vpop.f32.mrb[1].mxu0 }
 0x104   :  { %v113_v6 = vpop.f32.mrb[2].mxu0 }
 0x105   :  { %v165_v7 = vpack.c.bf16 %v113_v6, %v110_v4  ;;  %v177_v8 = vpop.f32.mrb[3].mxu0 }
 0x107   :  { %166 = vst [vmem:[#allocation8] sm:$0xff] %v165_v7  }
 0x108   :  { %243 = shalt.err (!%p240_p6)
}
 0x109   :  { %s244_s10 = scalar_lea.hbm %s329_s2, 128 }
 0x10a   :  { %p245_p7 = scmp.ne.s32.totalorder %s329_s2, %s244_s10  ;;  %p248_p8 = scmp.lt.u32.totalorder %s244_s10, %s329_s2 }
 0x10c   :  { %p250_p9 = pnand %p248_p8, %p245_p7 }
 0x10e   :  { %253 = shalt.err (!%p250_p9)
}
 0x10f   :  { %147 = dma.vmem_to_hbm [thread:$0]  %s142_s7, 128, %s329_s2, [#allocation5], %s261_s19, %s261_s19, %s262_s20  }
 0x110   :  { %258 = dma.done.wait [#allocation5], 128  }
 0x111   :  { %259 = vsyncadd [#allocation5], 4294967168 }
 0x112   :  { %151 = vsyncpa [#allocation4], 1 }
 0x113   :  { %152 = vsyncpa [#allocation7], 1 }
 0x114   :  { %153 = vsyncpa [#allocation5], 1 }

</bundles_post_ra>
